<compile_context>
chip_gen: v5e
topology: v5e:2x2
jax: 0.10.0
libtpu: 0.0.40
codegen_flags: <defaults>
</compile_context>

<pallas_src>
import functools

import jax
import jax.numpy as jnp
from jax import lax
from jax.experimental import pallas as pl
from jax.experimental.pallas import tpu as pltpu


# ---------------------------------------------------------------------------
# Kernel bodies
# ---------------------------------------------------------------------------
def _residual_block(x, left, right, w1_ref, w2_ref, *, split_taps, cdt):
    """conv2(relu(conv1(relu(x)))) + x for one (C, TL) tile.

    x           : (C, TL) f32 input tile (NCL; lanes = length axis).
    left, right : (C, 1)  f32 halo columns x[:, start-1] / x[:, end]; already
                  zero wherever the conv's zero padding applies.
    w1_ref      : (H, 3C) conv1 weights packed tap-major
                  (w1p[o, k*C + c] = W1[o, c, k]).
    w2_ref      : (C, H)  conv2 (1x1) weights.
    """
    h = jnp.maximum(x, 0.0)                      # relu in f32 (v5e VPU has no bf16)
    C, TL = h.shape
    left = jnp.maximum(left, 0.0)
    right = jnp.maximum(right, 0.0)

    # Shifted taps via XLU lane rotation + a one-lane fix-up (no concat of slices).
    lane = lax.broadcasted_iota(jnp.int32, (C, TL), 1)
    h_prev = jnp.where(lane == 0, left, pltpu.roll(h, shift=1, axis=1))
    h_next = jnp.where(lane == TL - 1, right, pltpu.roll(h, shift=TL - 1, axis=1))

    # Cast to the MXU compute dtype BEFORE any packing (bf16 is MXU-native on
    # v5e/v6e/v7x); accumulation stays f32 via preferred_element_type.
    h_prev = h_prev.astype(cdt)
    h_mid = h.astype(cdt)
    h_next = h_next.astype(cdt)

    if split_taps:
        # Large C: three accumulating MXU contractions — no (3C, TL) concat
        # buffer (saves VMEM vst/vld traffic; v7x MRB accumulates in place).
        y1 = jnp.dot(w1_ref[:, 0:C], h_prev, preferred_element_type=jnp.float32)
        y1 = y1 + jnp.dot(w1_ref[:, C:2 * C], h_mid,
                          preferred_element_type=jnp.float32)
        y1 = y1 + jnp.dot(w1_ref[:, 2 * C:3 * C], h_next,
                          preferred_element_type=jnp.float32)
    else:
        # Small C: one fused contraction with K = 3C keeps the MXU K dim fuller.
        stacked = jnp.concatenate([h_prev, h_mid, h_next], axis=0)   # (3C, TL)
        y1 = jnp.dot(w1_ref[...], stacked, preferred_element_type=jnp.float32)

    h2 = jnp.maximum(y1, 0.0).astype(cdt)
    y2 = jnp.dot(w2_ref[...], h2, preferred_element_type=jnp.float32)  # (C, TL)
    return y2 + x                                                      # residual in f32


def _kernel_halo(x_ref, halo_ref, w1_ref, w2_ref, o_ref, *, split_taps, cdt):
    left = halo_ref[:, 0:1]          # load only the needed columns
    right = halo_ref[:, 1:2]
    o_ref[...] = _residual_block(x_ref[...], left, right, w1_ref, w2_ref,
                                 split_taps=split_taps, cdt=cdt).astype(o_ref.dtype)


def _kernel_nohalo(x_ref, w1_ref, w2_ref, o_ref, *, split_taps, cdt):
    x = x_ref[...]
    zero = jnp.zeros((x.shape[0], 1), x.dtype)
    o_ref[...] = _residual_block(x, zero, zero, w1_ref, w2_ref,
                                 split_taps=split_taps, cdt=cdt).astype(o_ref.dtype)


# ---------------------------------------------------------------------------
# Wrapper
# ---------------------------------------------------------------------------
def _default_vmem_limit_bytes():
    """Per-generation VMEM limit: v7x has 64 MiB/TC; v5e/v6e have 128 MiB."""
    try:
        kind = jax.devices()[0].device_kind.lower()
    except Exception:
        kind = ""
    if "v7" in kind:
        return 48 * 1024 * 1024
    if "v6" in kind or "v5e" in kind or "v5 lite" in kind or "v5litepod" in kind:
        return 100 * 1024 * 1024
    return 48 * 1024 * 1024          # unknown generation: stay conservative


def _choose_tile_l(L, C, H, compute_dtype, budget_bytes, split_taps):
    """Largest L-tile (multiple of 128 dividing L) whose per-step VMEM estimate
    fits in budget_bytes."""
    assert L % 128 == 0
    f32 = 4
    cb = jnp.dtype(compute_dtype).itemsize

    def est(tl):
        io = 2 * 2 * C * tl * f32              # x tile + out tile, double-buffered
        halo = 2 * C * 2 * f32                 # packed boundary-column block (tiny)
        wts = 2 * 4 * H * C * cb               # (H,3C) + (C,H) weights, double-buffered
        # Live intermediates: h / h_prev / h_next / lane iota / masks / y1 / y2
        # in f32-equivalents, plus casted taps (+ concat copy when fused) and
        # relu(y1) in compute_dtype.
        inter_f32 = (6 * C + 2 * H) * tl * f32
        inter_cdt = ((3 if split_taps else 6) * C + H) * tl * cb
        return io + halo + wts + inter_f32 + inter_cdt

    m = L // 128
    best = 128
    for d in range(1, m + 1):
        if m % d == 0 and est(128 * d) <= budget_bytes:
            best = max(best, 128 * d)
    return best


def residual_layer(x_ncl, w1_torch, w2_torch, *, tile_l=None,
                   compute_dtype=jnp.bfloat16, split_taps=None,
                   vmem_limit_bytes=None):
    """x_ncl:    (B, C, L) float32 (PyTorch NCL layout).
    w1_torch: (H, C, 3) conv1 weight (out, in, k), no bias.
    w2_torch: (C, H, 1) conv2 weight (out, in, 1), no bias.
    Returns (B, C, L) = conv2(relu(conv1(relu(x)))) + x."""
    B, C, L = x_ncl.shape
    H = w1_torch.shape[0]
    assert w1_torch.shape == (H, C, 3) and w2_torch.shape == (C, H, 1)

    if vmem_limit_bytes is None:
        vmem_limit_bytes = _default_vmem_limit_bytes()
    if split_taps is None:
        split_taps = C >= 128     # keep the fused K=3C form only while C is small

    # Zero-pad L to a lane multiple: lane-dense (unmasked) output stores, and
    # exact for this op (relu(0)=0, conv padding is already zero).
    Lp = ((L + 127) // 128) * 128
    xp = x_ncl if Lp == L else jnp.pad(x_ncl, ((0, 0), (0, 0), (0, Lp - L)))

    # Pack weights once: conv1 tap-major (H, 3C), conv2 (C, H).
    w1p = jnp.transpose(w1_torch, (0, 2, 1)).reshape(H, 3 * C).astype(compute_dtype)
    w2m = w2_torch[:, :, 0].astype(compute_dtype)

    if tile_l is None:
        tile_l = _choose_tile_l(Lp, C, H, compute_dtype,
                                budget_bytes=(vmem_limit_bytes * 3) // 5,
                                split_taps=split_taps)
    assert Lp % tile_l == 0 and tile_l % 128 == 0, \
        "tile_l must be a multiple of 128 that divides the (padded) length"
    nt = Lp // tile_l

    x_spec = pl.BlockSpec((pl.Squeezed(), C, tile_l), lambda b, j: (b, 0, j))
    out_spec = pl.BlockSpec((pl.Squeezed(), C, tile_l), lambda b, j: (b, 0, j))
    w1_spec = pl.BlockSpec((H, 3 * C), lambda b, j: (0, 0))
    w2_spec = pl.BlockSpec((C, H), lambda b, j: (0, 0))
    # TODO(synk): single-buffer the constant weight blocks
    # (pipeline_mode=pl.Buffered(1)) when VMEM-tight on v7x with large C/H.

    if nt == 1:
        # No-halo variant: drop the boundary-column stream entirely.
        kernel = functools.partial(_kernel_nohalo, split_taps=split_taps,
                                   cdt=compute_dtype)
        in_specs = [x_spec, w1_spec, w2_spec]
        operands = (xp, w1p, w2m)
    else:
        # One packed boundary-column array: halo[b*nt+j, :, 0] = x[b,:,j*TL-1]
        # (zero for j == 0), halo[b*nt+j, :, 1] = x[b,:,(j+1)*TL] (zero for the
        # last tile).  One tiny extra block per step instead of two clamped
        # (C, 128) streams, and no in-kernel boundary masking needed.
        xr = xp.reshape(B, C, nt, tile_l)
        zcol = jnp.zeros((B, C, 1), xp.dtype)
        left = jnp.concatenate([zcol, xr[:, :, :nt - 1, tile_l - 1]], axis=2)
        right = jnp.concatenate([xr[:, :, 1:, 0], zcol], axis=2)
        halo = jnp.transpose(jnp.stack([left, right], axis=-1), (0, 2, 1, 3))
        halo = halo.reshape(B * nt, C, 2)

        halo_spec = pl.BlockSpec((pl.Squeezed(), C, 2),
                                 lambda b, j: (b * nt + j, 0, 0))
        kernel = functools.partial(_kernel_halo, split_taps=split_taps,
                                   cdt=compute_dtype)
        in_specs = [x_spec, halo_spec, w1_spec, w2_spec]
        operands = (xp, halo, w1p, w2m)

    out = pl.pallas_call(
        kernel,
        out_shape=jax.ShapeDtypeStruct((B, C, Lp), x_ncl.dtype),
        grid_spec=pltpu.PrefetchScalarGridSpec(
            num_scalar_prefetch=0,
            grid=(B, nt),
            in_specs=in_specs,
            out_specs=out_spec,
        ),
        compiler_params=pltpu.CompilerParams(
            # Batch axis first so megacore sharding (v7x's two TCs) splits on B
            # and each core keeps its L tiles (and their halos) contiguous.
            dimension_semantics=("parallel", "parallel"),
            vmem_limit_bytes=vmem_limit_bytes,
        ),
    )(*operands)

    return out if Lp == L else out[:, :, :L]


# ---------------------------------------------------------------------------
# Pure-JAX reference (matches the PyTorch forward)
# ---------------------------------------------------------------------------
def residual_layer_ref(x_ncl, w1_torch, w2_torch):
    h = jnp.maximum(x_ncl, 0.0)
    y1 = lax.conv_general_dilated(
        h, w1_torch, window_strides=(1,), padding=((1, 1),),
        dimension_numbers=("NCH", "OIH", "NCH"))
    h2 = jnp.maximum(y1, 0.0)
    y2 = lax.conv_general_dilated(
        h2, w2_torch, window_strides=(1,), padding=((0, 0),),
        dimension_numbers=("NCH", "OIH", "NCH"))
    return y2 + x_ncl


if __name__ == "__main__":
    B, C_in, H, L = 2, 4, 8, 256

    key = jax.random.PRNGKey(0)
    kx, k1, k2 = jax.random.split(key, 3)
    x = jax.random.normal(kx, (B, C_in, L), dtype=jnp.float32)          # NCL
    w1 = jax.random.normal(k1, (H, C_in, 3), dtype=jnp.float32) * 0.1   # conv1
    w2 = jax.random.normal(k2, (C_in, H, 1), dtype=jnp.float32) * 0.1   # conv2

    ref = jax.block_until_ready(residual_layer_ref(x, w1, w2))

    # 1) f32, forced 128-wide tiles -> exercises the packed-halo seam path.
    out_f32_tiled = jax.block_until_ready(
        residual_layer(x, w1, w2, tile_l=128, compute_dtype=jnp.float32))
    assert jnp.allclose(out_f32_tiled, ref, atol=1e-4, rtol=1e-4), "f32 tiled mismatch"

    # 2) f32, auto tile (single tile) -> exercises the no-halo variant.
    out_f32_auto = jax.block_until_ready(
        residual_layer(x, w1, w2, compute_dtype=jnp.float32))
    assert jnp.allclose(out_f32_auto, ref, atol=1e-4, rtol=1e-4), "f32 auto mismatch"

    # 3) default bf16 MXU compute (f32 accumulation), looser tolerance.
    out_bf16 = jax.block_until_ready(residual_layer(x, w1, w2, tile_l=128))
    assert jnp.allclose(out_bf16, ref, atol=5e-2, rtol=5e-2), "bf16 mismatch"

    # 4) split-tap (3-dot, concat-free) variant forced on for coverage.
    out_split = jax.block_until_ready(
        residual_layer(x, w1, w2, tile_l=128, compute_dtype=jnp.float32,
                       split_taps=True))
    assert jnp.allclose(out_split, ref, atol=1e-4, rtol=1e-4), "split-tap mismatch"

    # 5) unaligned L -> wrapper zero-pads to a lane multiple and slices back.
    Lu = 200
    xu = jax.random.normal(kx, (B, C_in, Lu), dtype=jnp.float32)
    refu = jax.block_until_ready(residual_layer_ref(xu, w1, w2))
    outu = jax.block_until_ready(
        residual_layer(xu, w1, w2, compute_dtype=jnp.float32))
    assert outu.shape == (B, C_in, Lu)
    assert jnp.allclose(outu, refu, atol=1e-4, rtol=1e-4), "padded-L mismatch"

    print("KERNEL_OK")
</pallas_src>

<mosaic_0001>
module attributes {stable_mosaic.version = 11 : i64} {
  func.func @_kernel_halo(%arg0: i32, %arg1: i32, %arg2: memref<1x4x128xf32, #tpu.memory_space<vmem>>, %arg3: memref<1x4x2xf32, #tpu.memory_space<vmem>>, %arg4: memref<8x12xf32, #tpu.memory_space<vmem>>, %arg5: memref<4x8xf32, #tpu.memory_space<vmem>>, %arg6: memref<1x4x128xf32, #tpu.memory_space<vmem>>) attributes {dimension_semantics = [#tpu.dimension_semantics<parallel>, #tpu.dimension_semantics<parallel>], iteration_bounds = array<i64: 2, 2>, scalar_prefetch = 0 : i64, scratch_operands = 0 : i64, tpu.core_type = #tpu.core_type<tc>, window_params = [{transform_indices = @transform_0, window_bounds = array<i64: 1, 4, 128>}, {transform_indices = @transform_1, window_bounds = array<i64: 1, 4, 2>}, {pipeline_mode = #tpu.pipeline_mode<synchronous>, transform_indices = @transform_2, window_bounds = array<i64: 8, 12>}, {pipeline_mode = #tpu.pipeline_mode<synchronous>, transform_indices = @transform_3, window_bounds = array<i64: 4, 8>}, {transform_indices = @transform_4, window_bounds = array<i64: 1, 4, 128>}]} {
    %c0 = arith.constant 0 : index
    %c0_0 = arith.constant 0 : index
    %c0_1 = arith.constant 0 : index
    %0 = vector.load %arg3[%c0, %c0_0, %c0_1] : memref<1x4x2xf32, #tpu.memory_space<vmem>>, vector<1x4x1xf32>
    %1 = vector.shape_cast %0 : vector<1x4x1xf32> to vector<4x1xf32>
    %c0_2 = arith.constant 0 : index
    %c0_3 = arith.constant 0 : index
    %c1 = arith.constant 1 : index
    %2 = vector.load %arg3[%c0_2, %c0_3, %c1] : memref<1x4x2xf32, #tpu.memory_space<vmem>>, vector<1x4x1xf32>
    %3 = vector.shape_cast %2 : vector<1x4x1xf32> to vector<4x1xf32>
    %c0_4 = arith.constant 0 : index
    %c0_5 = arith.constant 0 : index
    %c0_6 = arith.constant 0 : index
    %4 = vector.load %arg2[%c0_4, %c0_5, %c0_6] : memref<1x4x128xf32, #tpu.memory_space<vmem>>, vector<1x4x128xf32>
    %5 = vector.shape_cast %4 : vector<1x4x128xf32> to vector<4x128xf32>
    %cst = arith.constant 0.000000e+00 : f32
    %6 = vector.broadcast %cst : f32 to vector<4x128xf32>
    %7 = arith.maximumf %5, %6 : vector<4x128xf32>
    %cst_7 = arith.constant 0.000000e+00 : f32
    %8 = vector.broadcast %cst_7 : f32 to vector<4x1xf32>
    %9 = arith.maximumf %1, %8 : vector<4x1xf32>
    %cst_8 = arith.constant 0.000000e+00 : f32
    %10 = vector.broadcast %cst_8 : f32 to vector<4x1xf32>
    %11 = arith.maximumf %3, %10 : vector<4x1xf32>
    %12 = tpu.iota {dimensions = array<i32: 1>} : vector<4x128xi32>
    %c0_i32 = arith.constant 0 : i32
    %13 = vector.broadcast %c0_i32 : i32 to vector<4x128xi32>
    %14 = arith.cmpi eq, %12, %13 : vector<4x128xi32>
    %c1_i32 = arith.constant 1 : i32
    %15 = tpu.dynamic_rotate %7 by %c1_i32 dim 1 : vector<4x128xf32>, i32 -> vector<4x128xf32>
    %16 = vector.shape_cast %9 : vector<4x1xf32> to vector<4x1xf32>
    %17 = vector.broadcast %16 : vector<4x1xf32> to vector<4x128xf32>
    %18 = arith.select %14, %17, %15 : vector<4x128xi1>, vector<4x128xf32>
    %c127_i32 = arith.constant 127 : i32
    %19 = vector.broadcast %c127_i32 : i32 to vector<4x128xi32>
    %20 = arith.cmpi eq, %12, %19 : vector<4x128xi32>
    %c127_i32_9 = arith.constant 127 : i32
    %21 = tpu.dynamic_rotate %7 by %c127_i32_9 dim 1 : vector<4x128xf32>, i32 -> vector<4x128xf32>
    %22 = vector.shape_cast %11 : vector<4x1xf32> to vector<4x1xf32>
    %23 = vector.broadcast %22 : vector<4x1xf32> to vector<4x128xf32>
    %24 = arith.select %20, %23, %21 : vector<4x128xi1>, vector<4x128xf32>
    %25 = tpu.concatenate %18, %7, %24 in 0 : vector<4x128xf32>, vector<4x128xf32>, vector<4x128xf32> -> vector<12x128xf32>
    %c0_10 = arith.constant 0 : index
    %c0_11 = arith.constant 0 : index
    %26 = vector.load %arg4[%c0_10, %c0_11] : memref<8x12xf32, #tpu.memory_space<vmem>>, vector<8x12xf32>
    %cst_12 = arith.constant dense<0.000000e+00> : vector<8x128xf32>
    %27 = tpu.matmul %26, %25, %cst_12 {dimension_numbers = #tpu.dot_dimension_numbers<[1], [0], [0], [1], [0, 0, 1, 1], [], []>} : vector<8x12xf32>, vector<12x128xf32>, vector<8x128xf32> -> vector<8x128xf32>
    %cst_13 = arith.constant 0.000000e+00 : f32
    %28 = vector.broadcast %cst_13 : f32 to vector<8x128xf32>
    %29 = arith.maximumf %27, %28 : vector<8x128xf32>
    %c0_14 = arith.constant 0 : index
    %c0_15 = arith.constant 0 : index
    %30 = vector.load %arg5[%c0_14, %c0_15] : memref<4x8xf32, #tpu.memory_space<vmem>>, vector<4x8xf32>
    %cst_16 = arith.constant dense<0.000000e+00> : vector<4x128xf32>
    %31 = tpu.matmul %30, %29, %cst_16 {dimension_numbers = #tpu.dot_dimension_numbers<[1], [0], [0], [1], [0, 0, 1, 1], [], []>} : vector<4x8xf32>, vector<8x128xf32>, vector<4x128xf32> -> vector<4x128xf32>
    %32 = arith.addf %31, %5 : vector<4x128xf32>
    %c0_17 = arith.constant 0 : index
    %c0_18 = arith.constant 0 : index
    %c0_19 = arith.constant 0 : index
    %33 = vector.load %arg6[%c0_17, %c0_18, %c0_19] : memref<1x4x128xf32, #tpu.memory_space<vmem>>, vector<1x4x128xf32>
    %34 = vector.shape_cast %33 : vector<1x4x128xf32> to vector<4x128xf32>
    %35 = vector.shape_cast %32 : vector<4x128xf32> to vector<1x4x128xf32>
    tpu.vector_store %arg6[%c0_17, %c0_18, %c0_19], %35 {strides = array<i32>} : memref<1x4x128xf32, #tpu.memory_space<vmem>>, vector<1x4x128xf32>,
    return
  }
  func.func @transform_0(%arg0: i32, %arg1: i32) -> (i32, i32, i32) {
    %c0_i32 = arith.constant 0 : i32
    %c0_i32_0 = arith.constant 0 : i32
    return %arg0, %c0_i32, %arg1 : i32, i32, i32
  }
  func.func @transform_1(%arg0: i32, %arg1: i32) -> (i32, i32, i32) {
    %c2_i32 = arith.constant 2 : i32
    %0 = arith.muli %arg0, %c2_i32 : i32
    %1 = arith.addi %0, %arg1 : i32
    %c0_i32 = arith.constant 0 : i32
    %c0_i32_0 = arith.constant 0 : i32
    %c0_i32_1 = arith.constant 0 : i32
    return %1, %c0_i32, %c0_i32_0 : i32, i32, i32
  }
  func.func @transform_2(%arg0: i32, %arg1: i32) -> (i32, i32) {
    %c0_i32 = arith.constant 0 : i32
    %c0_i32_0 = arith.constant 0 : i32
    %c0_i32_1 = arith.constant 0 : i32
    return %c0_i32, %c0_i32_0 : i32, i32
  }
  func.func @transform_3(%arg0: i32, %arg1: i32) -> (i32, i32) {
    %c0_i32 = arith.constant 0 : i32
    %c0_i32_0 = arith.constant 0 : i32
    %c0_i32_1 = arith.constant 0 : i32
    return %c0_i32, %c0_i32_0 : i32, i32
  }
  func.func @transform_4(%arg0: i32, %arg1: i32) -> (i32, i32, i32) {
    %c0_i32 = arith.constant 0 : i32
    %c0_i32_0 = arith.constant 0 : i32
    return %arg0, %c0_i32, %arg1 : i32, i32, i32
  }
}

</mosaic_0001>

<bundles_post_ra>
// kernel: tpu_custom_call.1
= control target key start
LH: loop header
LB: loop body
LE: loop exit
PB: predicated region body
PF: predicated region fallthrough
CT: control target
= control target key end

     0   :  { %s876_s0 = inlined_call_operand.vmem [shape: f32[2,4,256], index: 0, kind: input, shape index: {}]   ;;  %s877_s1 = inlined_call_operand.vmem [shape: f32[4,4,2], index: 1, kind: input, shape index: {}]   ;;  %s878_s2 = inlined_call_operand.vmem [shape: f32[8,12], index: 2, kind: input, shape index: {}]   ;;  %s879_s3 = inlined_call_operand.hbm [shape: f32[4,8], index: 3, kind: input, shape index: {}]   ;;  %s880_s4 = inlined_call_operand.hbm [shape: f32[2,4,256], index: 4, kind: output, shape index: {}]  }
   0x1   :  { %881 = sst [smem:[#allocation8_spill]] %s879_s3 }
   0x2   :  { %9 = vsyncpa [#allocation3], 0 }
   0x3   :  { %10 = vsyncpa [#allocation4], 0 }
   0x4   :  { %12 = vsyncpa [#allocation4 + $0x1], 0  ;;  %s740_s15 = smov 0   ;;  %s742_s16 = smov 0  }
   0x5   :  { %s744_s17 = smov 0   ;;  %s746_s18 = smov 0  }
   0x6   :  { %s748_s19 = smov 0   ;;  %s750_s20 = smov 0  }
   0x7   :  { %s752_s21 = smov 0   ;;  %s754_s22 = smov 0  }
   0x8 LB: > { %s470_s23 = sadd.s32 4294967295, %s708_s22   ;;  %s471_s24 = sadd.s32 4294967294, %s708_s22   ;;  %s708_s22 = sphi %s754_s22, %s18_s22   ;;  %s704_s21 = sphi %s752_s21, %s891_s21   ;;  %s700_s20 = sphi %s750_s20, %s890_s20   ;;  %s696_s19 = sphi %s748_s19, %s889_s19   ;;  %s692_s18 = sphi %s746_s18, %s888_s18   ;;  %s688_s17 = sphi %s744_s17, %s887_s17   ;;  %s684_s16 = sphi %s742_s16, %s886_s16   ;;  %s680_s15 = sphi %s740_s15, %s885_s15  }
   0x9   : > { %s27_s25 = sadd.s32 1, %s700_s20  ;;  %s30_s26 = sadd.s32 1, %s704_s21 }
   0xa   : > { %p28_p0 = scmp.ge.s32.totalorder %s27_s25, 2  ;;  %s139_s27 = sadd.s32 1, %s688_s17 }
   0xb   : > { %p149_p1 = scmp.ne.s32.totalorder %s688_s17, %s684_s16  ;;  %p150_p2 = scmp.eq.s32.totalorder %s470_s23, 3 }
   0xc   : > { %s893_s25 = smov (%p28_p0, %s27_s25), 0  ;;  %s895_s26 = smov (!%p28_p0, %s30_s26), %s704_s21 }
   0xd   : > { %s135_s28 = ssub.s32 %s700_s20, %s893_s25  ;;  %p792_p3 = por %p150_p2, %p149_p1 }
   0xe   : > { %p32_p4 = scmp.ge.s32.totalorder %s895_s26, 2  ;;  %p155_p5 = scmp.ne.s32.totalorder %s684_s16, %s680_s15 }
   0xf   : > { %p156_p6 = scmp.eq.s32.totalorder %s471_s24, 3  ;;  %p474_p7 = scmp.ge.s32.totalorder %s708_s22, 1 }
  0x10   : > { %s897_s26 = smov (%p32_p4, %s895_s26), 0  ;;  %p163_p9 = scmp.lt.s32.totalorder %s708_s22, 5 }
  0x11   : > { %p801_p8 = por %p156_p6, %p155_p5  ;;  %s134_s5 = ssub.s32 %s704_s21, %s897_s26 }
  0x12   : > { %s136_s6 = sor.u32 %s135_s28, %s134_s5  ;;  %p164_p10 = pnand %p474_p7, %p163_p9 }
  0x13   : > { %p137_p11 = scmp.eq.s32.totalorder %s136_s6, 0  ;;  %p506_p12 = scmp.eq.s32.totalorder %s470_s23, 0 }
  0x14   : > { %p498_p13 = pneg %p164_p10  ;;  %s884_s3 = sld [smem:[#allocation8_spill]] }
  0x15   : > { %s812_s10 = scalar_select %p137_p11, %s688_s17, %s139_s27  }
  0x16   : > { %s710_s11 = smov [#allocation2]   ;;  %p499_p0 = pnand %p506_p12, %p498_p13 }
  0x17   : > { %s180_s12 = sshll.u32 %s710_s11, 4  ;;  %215 = sbr.rel (%p164_p10) target bundleno = 427 (0x1ab), region = 36  ;;  %s181_s12 = int_to_ptr.vmem [resolvable:$true] %s180_s12 }
  0x1a   : > { %s178_s9 = sshll.u32 %s884_s3, 4  ;;  %s179_s9 = int_to_ptr.hbm [resolvable:$true] %s178_s9 }
  0x1b   : > { %501 = dma.hbm_to_vmem [thread:$0]  (!%p499_p0), %s179_s9, 64, %s181_s12, [#allocation3]  }
  0x1c   : > { %671 = dma.done.wait (%p506_p12), [#allocation3], 64  }
  0x1d   : > { %673 = vsyncadd (%p506_p12), [#allocation3], 4294967232  ;;  %p251_p1 = scmp.lt.s32.totalorder %s696_s19, 1  ;;  %p253_p2 = scmp.lt.s32.totalorder %s692_s18, 1  ;;  %v711_v0 = vmov 1   ;;  %v712_v1 = vmov 0   ;;  %v271_v6 = vlaneseq }
  0x1e   : > { %578 = vset.pattern.permute.xlu0 %v711_v0  ;;  %579 = vset.pattern.permute.xlu1 %v712_v1  ;;  %s482_s24 = sshll.u32 %s696_s19, 1  ;;  %s713_s12 = smov 1   ;;  %vm293_vm2 = vcmask 1043456   ;;  %v295_v16 = vld [vmem:[%s878_s2] sm:$0xff]  ;;  %vm296_vm3 = vcmask 97280   ;;  %vm325_vm4 = vcmask 64512  }
  0x1f   : > { %s252_s13 = scalar_select %p251_p1, %s696_s19, 1  ;;  %v272_v9 = vand.u32 127, %v271_v6  ;;  %v324_v19 = vld [vmem:[#allocation2] sm:$0xf] }
  0x20   : > { %s254_s14 = scalar_select %p253_p2, %s692_s18, 1 }
  0x21   : > { %s480_s23 = sshll.u32 %s252_s13, 1  ;;  %s820_s28 = sadd.s32 %s692_s18, %s482_s24  ;;  %vm273_vm0 = vcmp.eq.s32.totalorder %v272_v9, 0  ;;  %vm282_vm1 = vcmp.eq.s32.totalorder %v272_v9, 127 }
  0x22   : > { %s256_s27 = sadd.s32 %s480_s23, %s254_s14  ;;  %p261_p4 = scmp.lt.s32.totalorder %s820_s28, 3 }
  0x23   : > { %s481_s5 = sshll.u32 %s256_s27, 2  ;;  %s714_s3 = smov 127  }
  0x24   : > { %s258_s8 = scalar_lea.vmem %s876_s0, %s481_s5  ;;  %s248_s23 = sand.u32 1, %s684_s16  }
  0x25   : > { %v268_v2 = vld [vmem:[%s258_s8] sm:$0xf]  ;;  %s262_s9 = scalar_select %p261_p4, %s820_s28, 3 }
  0x26   : > { %v269_v3 = vmax.f32 %v268_v2, 0.0  ;;  %s479_s24 = sshll.u32 %s248_s23, 2  ;;  %s489_s27 = sshll.u32 %s820_s28, 2 }
  0x27   : > { %s483_s11 = sshll.u32 %s262_s9, 2  ;;  %s363_s7 = scalar_lea.hbm %s880_s4, %s489_s27 }
  0x28   : > { %274 = vrot.lane.b32.xlu1 %v269_v3, %s713_s12  ;;  %283 = vrot.lane.b32.xlu0 %v269_v3, %s714_s3  ;;  %s264_s18 = scalar_lea.vmem %s877_s1, %s483_s11  ;;  %v291_v10 = vrot.slane %v269_v3, 4  ;;  %s250_s8 = scalar_lea.vmem [#allocation5], %s479_s24 }
  0x29   : > { %v267_v4 = vld [vmem:[%s264_s18] sm:$0xf]  ;;  %s365_s9 = sshll.u32 %s250_s8, 4  ;;  %s367_s11 = sshll.u32 %s363_s7, 4  ;;  %s366_s9 = int_to_ptr.vmem [resolvable:$true] %s365_s9  ;;  %s368_s11 = int_to_ptr.hbm [resolvable:$true] %s367_s11 }
  0x2a   : > { %v270_v5 = vmax.f32 %v267_v4, 0.0  ;;  %s351_s12 = scalar_lea.sflag [#allocation4], %s248_s23  ;;  %s624_s19 = sshra.s32 %s368_s11, 4  ;;  %s625_s19 = int_to_ptr.hbm [resolvable:$true] %s624_s19 }
  0x2b   : > { %s626_s13 = scalar_lea.hbm %s625_s19, 4  ;;  %s630_s3 = scalar_lea.hbm %s880_s4, 16 }
  0x2c   : > { %p627_p5 = scmp.ne.s32.totalorder %s625_s19, %s626_s13  ;;  %p631_p9 = scmp.lt.s32.totalorder %s625_s19, %s880_s4 }
  0x2d   : > { %p632_p10 = scmp.lt.s32.totalorder %s630_s3, %s626_s13 }
  0x2e   : > { %p628_p6 = pnand %p627_p5, %p792_p3 }
  0x2f   : > { %p633_p11 = por %p632_p10, %p631_p9 }
  0x30   : > { %278 = vperm.xlu1 %579, %v270_v5   ;;  %286 = vperm.xlu0 %578, %v270_v5   ;;  %p629_p7 = pneg %p628_p6 }
  0x32   : > { %p634_p12 = pnand %p633_p11, %p629_p7 }
  0x9a   : > { %v275_v7 = vpop.permute.xlu1 %274  ;;  %v284_v8 = vpop.permute.xlu0 %283 }
  0xa2   : > { %v279_v11 = vpop.permute.xlu1 %278  ;;  %v287_v12 = vpop.permute.xlu0 %286 }
  0xa3   : > { %v281_v13 = vsel %vm273_vm0, %v279_v11, %v275_v7  ;;  %v289_v14 = vsel %vm282_vm1, %v287_v12, %v284_v8 }
  0xa4   : > { %484 = vmatpush.msk.msra.mxu0 %vm293_vm2, %v289_v14  ;;  %v294_v15 = vsel %vm293_vm2, %v281_v13, %v291_v10 }
  0xa6   : > { %318 = vmatpush.msra.mxu0 %v294_v15 }
  0xa7   : > { %485 = vmatmul.msk.f32.vlgmr.msra.gmra.mxu0 %vm296_vm3, %v295_v16 }
 0x124   : > { %v320_v17 = vpop.f32.mrf.mxu0 }
 0x125   : > { %v323_v18 = vmax.f32 %v320_v17, 0.0 }
 0x127   : > { %344 = vmatpush.msra.mxu1 %v323_v18 }
 0x128   : > { %486 = vmatmul.msk.f32.vlgmr.msra.gmra.mxu1 %vm325_vm4, %v324_v19 }
 0x1a5   : > { %v346_v20 = vpop.f32.mrf.mxu1 }
 0x1a6   : > { %v347_v21 = vadd.f32 %v346_v20, %v268_v2 }
 0x1a8   : > { %349 = vst [vmem:[%s250_s8] sm:$0xf] %v347_v21 }
 0x1a9   : > { %637 = shalt.err (!%p634_p12)
}
 0x1aa   : > { %496 = dma.vmem_to_hbm [thread:$0]  (%p792_p3), %s366_s9, 64, %s368_s11, %s351_s12  }
 0x1ab PF: > { %p508_p13 = scmp.ge.s32.totalorder %s708_s22, 2  ;;  %s379_s23 = sand.u32 1, %s680_s15  }
 0x1ac   : > { %s380_s27 = scalar_lea.sflag [#allocation4], %s379_s23 }
 0x1ad   : > { %p503_p0 = pnand %p508_p13, %p801_p8 }
 0x1af   : > { %p504_p1 = pneg %p503_p0 }
 0x1b1   : > { %675 = dma.done.wait (%p504_p1), %s380_s27, 64  }
 0x1b2   : > { %677 = vsyncadd (%p504_p1), %s380_s27, 4294967232  ;;  %s18_s22 = sadd.s32 1, %s708_s22   ;;  %s885_s15 = smov %s684_s16 }
 0x1b3   : > { %p15_p2 = scmp.ge.s32.totalorder %s18_s22, 6   ;;  %s886_s16 = smov %s688_s17 }
 0x1b4   : > { %s887_s17 = smov %s812_s10  ;;  %s888_s18 = smov %s700_s20 }
 0x1b5   : > { %s889_s19 = smov %s704_s21  ;;  %s890_s20 = smov %s893_s25 }
 0x1b6   : > { %s891_s21 = smov %s897_s26  ;;  %17 = sbr.rel (!%p15_p2) target bundleno = 8 (0x8), region = 79 }
 0x1bb   :  { %386 = vsyncpa [#allocation3], 1 }
 0x1bc   :  { %388 = vsyncpa [#allocation3 + $0x1], 1 }
 0x1bd   :  { %389 = vsyncpa [#allocation4], 1 }
 0x1be   :  { %391 = vsyncpa [#allocation4 + $0x1], 1 }

</bundles_post_ra>
